<compile_context>
chip_gen: v6e
topology: v6e:2x2x1
jax: 0.10.0
libtpu: 0.0.40
codegen_flags: <defaults>
</compile_context>

<pallas_src>
import jax
import jax.numpy as jnp
from jax.experimental import pallas as pl
from jax.experimental.pallas import tpu as pltpu


def _round_up(x, m):
    return (x + m - 1) // m * m


def pgn_kernel(x_ref, w1_ref, b1_ref, w2_ref, b2_ref, o_ref):
    # First linear layer: (TM, in_pad) @ (in_pad, 128) + (1, 128), then ReLU.
    h = jnp.dot(x_ref[...], w1_ref[...], preferred_element_type=jnp.float32)
    h = jnp.maximum(h + b1_ref[...], 0.0)
    # Second linear layer: (TM, 128) @ (128, out_pad) + (1, out_pad).
    out = jnp.dot(h, w2_ref[...], preferred_element_type=jnp.float32)
    o_ref[...] = (out + b2_ref[...]).astype(o_ref.dtype)


def pgn_forward(x, w1, b1, w2, b2, *, tm=None):
    """x: (B, input_size) f32; w1: (input_size, 128); b1: (128,);
    w2: (128, n_actions); b2: (n_actions,).  Returns (B, n_actions) logits."""
    B, in_features = x.shape
    hidden = w1.shape[1]          # 128
    n_actions = w2.shape[1]       # e.g. 2

    # Padded dims: feature axis -> multiple of 8 (f32 sublane), output width ->
    # multiple of 128 (lane-dense stores).
    in_pad = _round_up(max(in_features, 8), 8)
    out_pad = _round_up(max(n_actions, 128), 128)

    # Row tile: big tiles amortize the ~0.35 us per-grid-step overhead; for a
    # small batch use one tile covering the whole (padded) batch.
    if tm is None:
        tm = 512 if B >= 512 else _round_up(B, 8)
    b_pad = _round_up(B, tm)

    # One-time zero-padding (cheap XLA pads; shapes are static per rollout B).
    x_p = jnp.zeros((b_pad, in_pad), x.dtype).at[:B, :in_features].set(x)
    w1_p = jnp.zeros((in_pad, hidden), w1.dtype).at[:in_features, :].set(w1)
    b1_p = b1.reshape(1, hidden)
    w2_p = jnp.zeros((hidden, out_pad), w2.dtype).at[:, :n_actions].set(w2)
    b2_p = jnp.zeros((1, out_pad), b2.dtype).at[:, :n_actions].set(
        b2.reshape(1, n_actions))

    grid = (b_pad // tm,)
    out = pl.pallas_call(
        pgn_kernel,
        out_shape=jax.ShapeDtypeStruct((b_pad, out_pad), x.dtype),
        grid_spec=pltpu.PrefetchScalarGridSpec(
            num_scalar_prefetch=0,
            grid=grid,
            in_specs=[
                # Activations: streamed per batch tile.
                pl.BlockSpec((tm, in_pad), lambda i: (i, 0)),
                # Weights / biases: constant index_map -> VMEM-resident.
                pl.BlockSpec((in_pad, hidden), lambda i: (0, 0)),
                pl.BlockSpec((1, hidden), lambda i: (0, 0)),
                pl.BlockSpec((hidden, out_pad), lambda i: (0, 0)),
                pl.BlockSpec((1, out_pad), lambda i: (0, 0)),
            ],
            out_specs=pl.BlockSpec((tm, out_pad), lambda i: (i, 0)),
        ),
        compiler_params=pltpu.CompilerParams(
            dimension_semantics=("parallel",)),
    )(x_p, w1_p, b1_p, w2_p, b2_p)

    # Strip batch / lane padding outside the kernel.
    return out[:B, :n_actions]


def init_pgn_params(key, input_size, n_actions, hidden=128):
    """Deterministic init mimicking PyTorch's default nn.Linear init
    (uniform(-1/sqrt(fan_in), 1/sqrt(fan_in))), stored as (in, out)."""
    k1, k2, k3, k4 = jax.random.split(key, 4)
    bound1 = 1.0 / jnp.sqrt(input_size)
    bound2 = 1.0 / jnp.sqrt(hidden)
    w1 = jax.random.uniform(k1, (input_size, hidden), jnp.float32, -bound1, bound1)
    b1 = jax.random.uniform(k2, (hidden,), jnp.float32, -bound1, bound1)
    w2 = jax.random.uniform(k3, (hidden, n_actions), jnp.float32, -bound2, bound2)
    b2 = jax.random.uniform(k4, (n_actions,), jnp.float32, -bound2, bound2)
    return w1, b1, w2, b2


def _reference(x, w1, b1, w2, b2):
    return jnp.maximum(x @ w1 + b1, 0.0) @ w2 + b2


if __name__ == "__main__":
    key = jax.random.PRNGKey(0)
    k_param, k_x_small, k_x_big = jax.random.split(key, 3)

    # CartPole: observation size 4, 2 actions.
    input_size, n_actions = 4, 2
    w1, b1, w2, b2 = init_pgn_params(k_param, input_size, n_actions)

    # Small batch (single-tile path).
    x_small = jax.random.normal(k_x_small, (8, input_size), jnp.float32)
    logits_small = pgn_forward(x_small, w1, b1, w2, b2)
    jax.block_until_ready(logits_small)
    ref_small = _reference(x_small, w1, b1, w2, b2)
    assert logits_small.shape == (8, n_actions)
    assert jnp.allclose(logits_small, ref_small, atol=1e-5, rtol=1e-5)

    # Larger (vectorized-envs style) batch exercising the batch grid + padding.
    x_big = jax.random.normal(k_x_big, (600, input_size), jnp.float32)
    logits_big = pgn_forward(x_big, w1, b1, w2, b2)   # tm=512, grid=(2,)
    jax.block_until_ready(logits_big)
    ref_big = _reference(x_big, w1, b1, w2, b2)
    assert logits_big.shape == (600, n_actions)
    assert jnp.allclose(logits_big, ref_big, atol=1e-5, rtol=1e-5)

    print("KERNEL_OK")
</pallas_src>

<mosaic_0001>
module attributes {stable_mosaic.version = 11 : i64} {
  func.func @pgn_kernel(%arg0: i32, %arg1: memref<8x8xf32, #tpu.memory_space<vmem>>, %arg2: memref<8x128xf32, #tpu.memory_space<vmem>>, %arg3: memref<1x128xf32, #tpu.memory_space<vmem>>, %arg4: memref<128x128xf32, #tpu.memory_space<vmem>>, %arg5: memref<1x128xf32, #tpu.memory_space<vmem>>, %arg6: memref<8x128xf32, #tpu.memory_space<vmem>>) attributes {dimension_semantics = [#tpu.dimension_semantics<parallel>], iteration_bounds = array<i64: 1>, scalar_prefetch = 0 : i64, scratch_operands = 0 : i64, tpu.core_type = #tpu.core_type<tc>, window_params = [{transform_indices = @transform_0, window_bounds = array<i64: 8, 8>}, {pipeline_mode = #tpu.pipeline_mode<synchronous>, transform_indices = @transform_1, window_bounds = array<i64: 8, 128>}, {pipeline_mode = #tpu.pipeline_mode<synchronous>, transform_indices = @transform_2, window_bounds = array<i64: 1, 128>}, {pipeline_mode = #tpu.pipeline_mode<synchronous>, transform_indices = @transform_3, window_bounds = array<i64: 128, 128>}, {pipeline_mode = #tpu.pipeline_mode<synchronous>, transform_indices = @transform_4, window_bounds = array<i64: 1, 128>}, {transform_indices = @transform_5, window_bounds = array<i64: 8, 128>}]} {
    %c0 = arith.constant 0 : index
    %c0_0 = arith.constant 0 : index
    %0 = vector.load %arg1[%c0, %c0_0] : memref<8x8xf32, #tpu.memory_space<vmem>>, vector<8x8xf32>
    %c0_1 = arith.constant 0 : index
    %c0_2 = arith.constant 0 : index
    %1 = vector.load %arg2[%c0_1, %c0_2] : memref<8x128xf32, #tpu.memory_space<vmem>>, vector<8x128xf32>
    %cst = arith.constant dense<0.000000e+00> : vector<8x128xf32>
    %2 = tpu.matmul %0, %1, %cst {dimension_numbers = #tpu.dot_dimension_numbers<[1], [0], [0], [1], [0, 0, 1, 1], [], []>} : vector<8x8xf32>, vector<8x128xf32>, vector<8x128xf32> -> vector<8x128xf32>
    %c0_3 = arith.constant 0 : index
    %c0_4 = arith.constant 0 : index
    %3 = vector.load %arg3[%c0_3, %c0_4] : memref<1x128xf32, #tpu.memory_space<vmem>>, vector<1x128xf32>
    %4 = vector.broadcast %3 : vector<1x128xf32> to vector<8x128xf32>
    %5 = arith.addf %2, %4 : vector<8x128xf32>
    %cst_5 = arith.constant 0.000000e+00 : f32
    %6 = vector.broadcast %cst_5 : f32 to vector<8x128xf32>
    %7 = arith.maximumf %5, %6 : vector<8x128xf32>
    %c0_6 = arith.constant 0 : index
    %c0_7 = arith.constant 0 : index
    %8 = vector.load %arg4[%c0_6, %c0_7] : memref<128x128xf32, #tpu.memory_space<vmem>>, vector<128x128xf32>
    %cst_8 = arith.constant dense<0.000000e+00> : vector<8x128xf32>
    %9 = tpu.matmul %7, %8, %cst_8 {dimension_numbers = #tpu.dot_dimension_numbers<[1], [0], [0], [1], [0, 0, 1, 1], [], []>} : vector<8x128xf32>, vector<128x128xf32>, vector<8x128xf32> -> vector<8x128xf32>
    %c0_9 = arith.constant 0 : index
    %c0_10 = arith.constant 0 : index
    %10 = vector.load %arg5[%c0_9, %c0_10] : memref<1x128xf32, #tpu.memory_space<vmem>>, vector<1x128xf32>
    %11 = vector.broadcast %10 : vector<1x128xf32> to vector<8x128xf32>
    %12 = arith.addf %9, %11 : vector<8x128xf32>
    %c0_11 = arith.constant 0 : index
    %c0_12 = arith.constant 0 : index
    %13 = vector.load %arg6[%c0_11, %c0_12] : memref<8x128xf32, #tpu.memory_space<vmem>>, vector<8x128xf32>
    tpu.vector_store %arg6[%c0_11, %c0_12], %12 {strides = array<i32>} : memref<8x128xf32, #tpu.memory_space<vmem>>, vector<8x128xf32>,
    return
  }
  func.func @transform_0(%arg0: i32) -> (i32, i32) {
    %c0_i32 = arith.constant 0 : i32
    %c0_i32_0 = arith.constant 0 : i32
    return %arg0, %c0_i32 : i32, i32
  }
  func.func @transform_1(%arg0: i32) -> (i32, i32) {
    %c0_i32 = arith.constant 0 : i32
    %c0_i32_0 = arith.constant 0 : i32
    %c0_i32_1 = arith.constant 0 : i32
    return %c0_i32, %c0_i32_0 : i32, i32
  }
  func.func @transform_2(%arg0: i32) -> (i32, i32) {
    %c0_i32 = arith.constant 0 : i32
    %c0_i32_0 = arith.constant 0 : i32
    %c0_i32_1 = arith.constant 0 : i32
    return %c0_i32, %c0_i32_0 : i32, i32
  }
  func.func @transform_3(%arg0: i32) -> (i32, i32) {
    %c0_i32 = arith.constant 0 : i32
    %c0_i32_0 = arith.constant 0 : i32
    %c0_i32_1 = arith.constant 0 : i32
    return %c0_i32, %c0_i32_0 : i32, i32
  }
  func.func @transform_4(%arg0: i32) -> (i32, i32) {
    %c0_i32 = arith.constant 0 : i32
    %c0_i32_0 = arith.constant 0 : i32
    %c0_i32_1 = arith.constant 0 : i32
    return %c0_i32, %c0_i32_0 : i32, i32
  }
  func.func @transform_5(%arg0: i32) -> (i32, i32) {
    %c0_i32 = arith.constant 0 : i32
    %c0_i32_0 = arith.constant 0 : i32
    return %arg0, %c0_i32 : i32, i32
  }
}

</mosaic_0001>

<bundles_post_ra>
// kernel: tpu_custom_call.1
= control target key start
LH: loop header
LB: loop body
LE: loop exit
PB: predicated region body
PF: predicated region fallthrough
CT: control target
= control target key end

     0   :  { %10 = vsyncpa [#allocation3], 0  ;;  %s464_s0 = inlined_call_operand.hbm [shape: f32[8,8], index: 0, kind: input, shape index: {}]   ;;  %s465_s1 = inlined_call_operand.hbm [shape: f32[8,128], index: 1, kind: input, shape index: {}]   ;;  %s466_s2 = inlined_call_operand.vmem [shape: f32[1,128], index: 2, kind: input, shape index: {}]   ;;  %s467_s3 = inlined_call_operand.hbm [shape: f32[128,128], index: 3, kind: input, shape index: {}]   ;;  %s468_s4 = inlined_call_operand.vmem [shape: f32[1,128], index: 4, kind: input, shape index: {}]   ;;  %s469_s5 = inlined_call_operand.hbm [shape: f32[8,128], index: 5, kind: output, shape index: {}]  }
   0x1   :  { %11 = vsyncpa [#allocation6], 0 }
   0x2   :  { %12 = vsyncpa [#allocation4], 0  ;;  %s408_s18 = smov [#allocation5]   ;;  %s409_s20 = smov [#allocation2]  }
   0x3   :  { %s29_s19 = sshll.u32 %s408_s18, 4  ;;  %s19_s21 = sshll.u32 %s409_s20, 4  ;;  %s30_s19 = int_to_ptr.vmem [resolvable:$true] %s29_s19  ;;  %s20_s21 = int_to_ptr.vmem [resolvable:$true] %s19_s21 }
   0x4   :  { %s330_s22 = scalar_lea.vmem %s30_s19, 128  ;;  %p335_p1 = scmp.lt.s32.totalorder %s30_s19, %s30_s19 }
   0x5   :  { %p331_p0 = scmp.ne.s32.totalorder %s30_s19, %s330_s22  ;;  %p336_p2 = scmp.lt.s32.totalorder %s330_s22, %s330_s22 }
   0x7   :  { %p337_p3 = por %p336_p2, %p335_p1 }
   0x9   :  { %p338_p4 = pnand %p337_p3, %p331_p0 }
   0xb   :  { %341 = shalt.err (!%p338_p4)
}
   0xc   :  { %32 = dma.hbm_to_vmem [thread:$0]  %s465_s1, 128, %s30_s19, [#allocation6]  }
   0xd   :  { %s350_s25 = scalar_lea.vmem %s20_s21, 128  ;;  %p355_p6 = scmp.lt.s32.totalorder %s20_s21, %s20_s21 }
   0xe   :  { %p351_p5 = scmp.ne.s32.totalorder %s20_s21, %s350_s25  ;;  %p356_p7 = scmp.lt.s32.totalorder %s350_s25, %s350_s25 }
  0x10   :  { %p357_p8 = por %p356_p7, %p355_p6 }
  0x12   :  { %p358_p9 = pnand %p357_p8, %p351_p5 }
  0x14   :  { %361 = shalt.err (!%p358_p9)
}
  0x15   :  { %22 = dma.hbm_to_vmem [thread:$0]  %s464_s0, 128, %s20_s21, [#allocation3]  }
  0x16   :  { %s410_s28 = smov [#allocation7]  }
  0x17   :  { %s40_s29 = sshll.u32 %s410_s28, 4  ;;  %s41_s29 = int_to_ptr.vmem [resolvable:$true] %s40_s29 }
  0x18   :  { %s370_s30 = scalar_lea.vmem %s41_s29, 2048  ;;  %p375_p11 = scmp.lt.s32.totalorder %s41_s29, %s41_s29 }
  0x19   :  { %p371_p10 = scmp.ne.s32.totalorder %s41_s29, %s370_s30  ;;  %p376_p12 = scmp.lt.s32.totalorder %s370_s30, %s370_s30 }
  0x1b   :  { %p377_p13 = por %p376_p12, %p375_p11 }
  0x1d   :  { %p378_p0 = pnand %p377_p13, %p371_p10 }
  0x1f   :  { %381 = shalt.err (!%p378_p0)
}
  0x20   :  { %s411_s1 = smov 128   ;;  %s412_s6 = smov 8  }
  0x21   :  { %46 = dma.hbm_to_vmem [thread:$0]  %s467_s3, 2048, %s41_s29, [#allocation6], %s411_s1, %s411_s1, %s412_s6  }
  0x22   :  { %402 = dma.done.wait [#allocation3], 128  }
  0x23   :  { %403 = vsyncadd [#allocation3], 4294967168 }
  0x24   :  { %404 = dma.done.wait [#allocation6], 2176  }
  0x25   :  { %405 = vsyncadd [#allocation6], 4294965120  ;;  %v413_v0 = vmov 0.0   ;;  %vm414_vm0 = vmmov 0   ;;  %vm67_vm1 = vcmask 64512   ;;  %v59_v1 = vld [vmem:[#allocation5] sm:$0xff] }
  0x26   :  { %274 = vmatprep.subr.mxu0 %v413_v0  ;;  %276 = vmatprep.mubr.msk.f32.mxu0 %vm414_vm0, %v413_v0  ;;  %v58_v2 = vld [vmem:[#allocation2] sm:$0xff]  ;;  %v157_v3 = vld [vmem:[#allocation7 + $0x78] sm:$0xff]  ;;  %v155_v5 = vld [vmem:[#allocation7 + $0x68] sm:$0xff]  ;;  %s415_s11 = smov [#allocation8]  }
  0x27   :  { %279 = vmatprep.subr.mxu1 %v413_v0  ;;  %311 = vmatprep.mubr.msk.f32.mxu1 %vm414_vm0, %v413_v0  ;;  %v156_v4 = vld [vmem:[#allocation7 + $0x70] sm:$0xff]  ;;  %v154_v6 = vld [vmem:[#allocation7 + $0x60] sm:$0xff]  ;;  %v153_v7 = vld [vmem:[#allocation7 + $0x58] sm:$0xff]  ;;  %s242_s12 = sshll.u32 %s415_s11, 4  ;;  %s243_s12 = int_to_ptr.vmem [resolvable:$true] %s242_s12 }
  0x28   :  { %275 = vmatpush3.msra.mxu0 %v59_v1  ;;  %280 = vmatpush3.msra.mxu1 %v157_v3  ;;  %v152_v8 = vld [vmem:[#allocation7 + $0x50] sm:$0xff]  ;;  %v151_v9 = vld [vmem:[#allocation7 + $0x48] sm:$0xff]  ;;  %v150_v10 = vld [vmem:[#allocation7 + $0x40] sm:$0xff]  ;;  %s382_s13 = scalar_lea.vmem %s243_s12, 128  ;;  %p387_p2 = scmp.lt.s32.totalorder %s243_s12, %s243_s12 }
  0x29   :  { %277 = vmatmul.mubr.msk.f32.vlgmr.msra.gmra.mxu0 %vm67_vm1, %v58_v2  ;;  %281 = vmatprep.subr.mxu1 %v413_v0  ;;  %v149_v11 = vld [vmem:[#allocation7 + $0x38] sm:$0xff]  ;;  %v148_v12 = vld [vmem:[#allocation7 + $0x30] sm:$0xff]  ;;  %v147_v13 = vld [vmem:[#allocation7 + $0x28] sm:$0xff]  ;;  %p383_p1 = scmp.ne.s32.totalorder %s243_s12, %s382_s13  ;;  %p388_p3 = scmp.lt.s32.totalorder %s382_s13, %s382_s13 }
  0x2a   :  { %282 = vmatpush3.msra.mxu1 %v156_v4  ;;  %v146_v14 = vld [vmem:[#allocation7 + $0x20] sm:$0xff]  ;;  %v145_v15 = vld [vmem:[#allocation7 + $0x18] sm:$0xff]  ;;  %v144_v16 = vld [vmem:[#allocation7 + $0x10] sm:$0xff] }
  0x2b   :  { %283 = vmatprep.subr.mxu1 %v413_v0  ;;  %v143_v17 = vld [vmem:[#allocation7 + $0x8] sm:$0xff]  ;;  %v142_v18 = vld [vmem:[#allocation7] sm:$0xff]  ;;  %v252_v19 = vld [vmem:[%s466_s2] ss:$0 sm:$0xff]  ;;  %p389_p4 = por %p388_p3, %p387_p2 }
  0x2c   :  { %284 = vmatpush3.msra.mxu1 %v155_v5  ;;  %v254_v24 = vld [vmem:[%s468_s4] ss:$0 sm:$0xff] }
  0x2d   :  { %285 = vmatprep.subr.mxu1 %v413_v0  ;;  %p390_p5 = pnand %p389_p4, %p383_p1 }
  0x2e   :  { %286 = vmatpush3.msra.mxu1 %v154_v6 }
  0x2f   :  { %287 = vmatprep.subr.mxu1 %v413_v0 }
  0x30   :  { %288 = vmatpush3.msra.mxu1 %v153_v7 }
  0x31   :  { %289 = vmatprep.subr.mxu1 %v413_v0 }
  0x32   :  { %290 = vmatpush3.msra.mxu1 %v152_v8 }
  0x33   :  { %291 = vmatprep.subr.mxu1 %v413_v0 }
  0x34   :  { %292 = vmatpush3.msra.mxu1 %v151_v9 }
  0x35   :  { %293 = vmatprep.subr.mxu1 %v413_v0 }
  0x36   :  { %294 = vmatpush3.msra.mxu1 %v150_v10 }
  0x37   :  { %295 = vmatprep.subr.mxu1 %v413_v0 }
  0x38   :  { %296 = vmatpush3.msra.mxu1 %v149_v11 }
  0x39   :  { %297 = vmatprep.subr.mxu1 %v413_v0 }
  0x3a   :  { %298 = vmatpush3.msra.mxu1 %v148_v12 }
  0x3b   :  { %299 = vmatprep.subr.mxu1 %v413_v0 }
  0x3c   :  { %300 = vmatpush3.msra.mxu1 %v147_v13 }
  0x3d   :  { %301 = vmatprep.subr.mxu1 %v413_v0 }
  0x3e   :  { %302 = vmatpush3.msra.mxu1 %v146_v14 }
  0x3f   :  { %303 = vmatprep.subr.mxu1 %v413_v0 }
  0x40   :  { %304 = vmatpush3.msra.mxu1 %v145_v15 }
  0x41   :  { %305 = vmatprep.subr.mxu1 %v413_v0 }
  0x42   :  { %306 = vmatpush3.msra.mxu1 %v144_v16 }
  0x43   :  { %307 = vmatprep.subr.mxu1 %v413_v0 }
  0x44   :  { %308 = vmatpush3.msra.mxu1 %v143_v17 }
  0x45   :  { %309 = vmatprep.subr.mxu1 %v413_v0 }
  0x46   :  { %310 = vmatpush3.msra.mxu1 %v142_v18 }
  0xe9   :  { %v137_v20 = vpop.f32.mrf.mxu0 }
  0xea   :  { %v138_v21 = vadd.f32 %v252_v19, %v137_v20 }
  0xeb   :  { %v278_v22 = vpop.f32.mrf.mxu0 }
  0xec   :  { %v141_v23 = vmax.f32 %v138_v21, 0.0 }
  0xee   :  { %312 = vmatmul.mubr.f32.vlgmr.msra.gmra.mxu1 %v141_v23 }
 0x1ae   :  { %v231_v25 = vpop.f32.mrf.mxu1 }
 0x1af   :  { %v232_v26 = vadd.f32 %v254_v24, %v231_v25 }
 0x1b0   :  { %v313_v27 = vpop.f32.mrf.mxu1 }
 0x1b1   :  { %235 = vst [vmem:[#allocation8] sm:$0xff] %v232_v26 }
 0x1b2   :  { %393 = shalt.err (!%p390_p5)
}
 0x1b3   :  { %245 = dma.vmem_to_hbm [thread:$0]  %s243_s12, 128, %s469_s5, [#allocation4]  }
 0x1b4   :  { %406 = dma.done.wait [#allocation4], 128  }
 0x1b5   :  { %407 = vsyncadd [#allocation4], 4294967168 }
 0x1b6   :  { %249 = vsyncpa [#allocation3], 1 }
 0x1b7   :  { %250 = vsyncpa [#allocation6], 1 }
 0x1b8   :  { %251 = vsyncpa [#allocation4], 1 }

</bundles_post_ra>
